<compile_context>
chip_gen: v7x
topology: tpu7x:2x2x1
jax: 0.10.0
libtpu: 0.0.40
codegen_flags: <defaults>
</compile_context>

<pallas_src>
import jax
import jax.numpy as jnp
from jax.experimental import pallas as pl
from jax.experimental.pallas import tpu as pltpu

SEQ = 2  # fixed by the module: fc input dim is hidden_size * 2


def lstm_xor_kernel(x_ref, wih_ref, whh_ref, b_ref, fcw_ref, fcb_ref, out_ref):
    """LSTM (seq=2, t=0 peeled) + fused Linear head for one batch tile.

    x_ref   : (TB, SEQ)   float32   input values
    wih_ref : (1, 4H)     float32   LSTM input weights (input_size=1),
                                    gate order (i, f, o, g), g columns pre-scaled by 2
    whh_ref : (H, 4H)     float32   LSTM recurrent weights, transposed, same layout
    b_ref   : (1, 4H)     float32   b_ih + b_hh combined, same layout
    fcw_ref : (2, H)      float32   fc weight; row 0 multiplies h(t=0), row 1 h(t=1)
    fcb_ref : (1, 1)      float32   fc bias (SMEM)
    out_ref : (TB, 1)     float32   output logits for this tile
    """
    H = whh_ref.shape[0]

    wih = wih_ref[...]          # (1, 4H)
    whh = whh_ref[...]          # (H, 4H)
    bias = b_ref[...]           # (1, 4H)
    fcw0 = fcw_ref[0:1, :]      # (1, H)
    fcw1 = fcw_ref[1:2, :]      # (1, H)
    fcb = fcb_ref[0, 0]         # scalar from SMEM

    def activations(gates):
        # Single EUP pass: sigmoid over the full 4H lanes.  The g columns were
        # pre-scaled by 2 in the wrapper, so tanh(z) = 2*sigmoid(2z) - 1 is a
        # cheap VPU fixup on the last H lanes.
        sig = jax.nn.sigmoid(gates)
        i = sig[:, 0:H]
        f = sig[:, H:2 * H]
        o = sig[:, 2 * H:3 * H]
        g = 2.0 * sig[:, 3 * H:4 * H] - 1.0
        return i, f, o, g

    # ---- t = 0: h_prev = c_prev = 0 -> no recurrent matmul ----
    x0 = x_ref[:, 0:1]                                    # (TB, 1)
    gates0 = x0 * wih + bias                              # (TB, 4H) broadcast
    i0, _f0, o0, g0 = activations(gates0)
    c = i0 * g0                                           # f0 * c_prev == 0
    h = o0 * jnp.tanh(c)
    acc_vec = h * fcw0                                    # (TB, H) fc contribution

    # ---- t = 1: the only MXU matmul ----
    x1 = x_ref[:, 1:2]
    gates1 = (x1 * wih
              + jnp.dot(h, whh, preferred_element_type=jnp.float32)
              + bias)
    i1, f1, o1, g1 = activations(gates1)
    c = f1 * c + i1 * g1
    h = o1 * jnp.tanh(c)
    acc_vec = acc_vec + h * fcw1                          # (TB, H)

    # Single cross-lane reduce for the fc head.
    out_ref[...] = jnp.sum(acc_vec, axis=-1, keepdims=True) + fcb


def _round_up(n, m):
    return (n + m - 1) // m * m


def lstm_xor_forward(x, w_ih, w_hh, b_ih, b_hh, fc_w, fc_b, hidden_size,
                     batch_tile=1024):
    """Wrapper: parameter re-layout (glue) + gridded pallas_call.

    x    : (B, SEQ) float32
    w_ih : (4H, 1), w_hh : (4H, H), b_ih/b_hh : (4H,)   (PyTorch nn.LSTM layout, i,f,g,o)
    fc_w : (1, 2H), fc_b : (1,)                          (PyTorch nn.Linear layout)
    """
    B = x.shape[0]
    H = hidden_size

    # --- re-order gates from PyTorch (i, f, g, o) to (i, f, o, g) and
    #     pre-scale the g-gate block by 2 so tanh folds into one sigmoid ---
    def reorder_scale(w):
        i, f, g, o = jnp.split(w, 4, axis=0)
        return jnp.concatenate([i, f, o, 2.0 * g], axis=0)

    wih_row = reorder_scale(w_ih).reshape(1, 4 * H)        # (1, 4H)
    whh_t = reorder_scale(w_hh).T                          # (H, 4H)
    b_row = reorder_scale(b_ih + b_hh).reshape(1, 4 * H)   # (1, 4H)
    fcw2 = fc_w.reshape(2, H)                              # row 0 -> h0, row 1 -> h1
    fcb = fc_b.reshape(1, 1)                               # scalar for SMEM

    # --- batch tiling (sublane-aligned) ---
    if B > 16:
        # Cap the tile at ceil(B/2) so there are always >= 2 grid steps and the
        # "parallel" axis can shard across v7x's two TensorCores.
        TB = min(_round_up(pl.cdiv(B, 2), 8), batch_tile)
    else:
        TB = _round_up(B, 8)
    B_pad = _round_up(B, TB)
    if B_pad != B:
        x = jnp.pad(x, ((0, B_pad - B), (0, 0)))

    out = pl.pallas_call(
        lstm_xor_kernel,
        out_shape=jax.ShapeDtypeStruct((B_pad, 1), jnp.float32),
        grid=(B_pad // TB,),
        in_specs=[
            pl.BlockSpec((TB, SEQ), lambda i: (i, 0)),          # x: tiled over batch
            pl.BlockSpec((1, 4 * H), lambda i: (0, 0)),         # w_ih row (resident)
            pl.BlockSpec((H, 4 * H), lambda i: (0, 0)),         # w_hh^T (resident)
            pl.BlockSpec((1, 4 * H), lambda i: (0, 0)),         # bias (resident)
            pl.BlockSpec((2, H), lambda i: (0, 0)),             # fc weight halves
            pl.BlockSpec(memory_space=pltpu.MemorySpace.SMEM),  # fc bias scalar
        ],
        out_specs=pl.BlockSpec((TB, 1), lambda i: (i, 0)),
        compiler_params=pltpu.CompilerParams(
            dimension_semantics=("parallel",)),
    )(x, wih_row, whh_t, b_row, fcw2, fcb)

    return out[:B, 0]                    # matches torch .squeeze() for B > 1


def lstm_xor_reference(x, w_ih, w_hh, b_ih, b_hh, fc_w, fc_b, hidden_size):
    """Pure-JAX reference mirroring PyTorch nn.LSTM + nn.Linear."""
    B = x.shape[0]
    H = hidden_size
    h = jnp.zeros((B, H), jnp.float32)
    c = jnp.zeros((B, H), jnp.float32)
    ys = []
    for t in range(SEQ):
        x_t = x[:, t : t + 1]                                   # (B, 1)
        gates = x_t @ w_ih.T + h @ w_hh.T + b_ih + b_hh         # (B, 4H), order i,f,g,o
        i_g = jax.nn.sigmoid(gates[:, 0 * H : 1 * H])
        f_g = jax.nn.sigmoid(gates[:, 1 * H : 2 * H])
        g_g = jnp.tanh(gates[:, 2 * H : 3 * H])
        o_g = jax.nn.sigmoid(gates[:, 3 * H : 4 * H])
        c = f_g * c + i_g * g_g
        h = o_g * jnp.tanh(c)
        ys.append(h)
    y_flat = jnp.concatenate(ys, axis=1)                        # (B, 2H)
    return (y_flat @ fc_w.T + fc_b).squeeze(-1)


if __name__ == "__main__":
    B = 8            # batch
    H = 32           # hidden_size
    INPUT_SIZE = 1   # implied by x.unsqueeze(2)

    key = jax.random.PRNGKey(0)
    ks = jax.random.split(key, 7)
    bound = 1.0 / jnp.sqrt(jnp.float32(H))  # PyTorch default uniform init range

    x = jax.random.bernoulli(ks[0], 0.5, (B, SEQ)).astype(jnp.float32)
    w_ih = jax.random.uniform(ks[1], (4 * H, INPUT_SIZE), jnp.float32, -bound, bound)
    w_hh = jax.random.uniform(ks[2], (4 * H, H), jnp.float32, -bound, bound)
    b_ih = jax.random.uniform(ks[3], (4 * H,), jnp.float32, -bound, bound)
    b_hh = jax.random.uniform(ks[4], (4 * H,), jnp.float32, -bound, bound)
    fc_w = jax.random.uniform(ks[5], (1, 2 * H), jnp.float32, -bound, bound)
    fc_b = jax.random.uniform(ks[6], (1,), jnp.float32, -bound, bound)

    y = lstm_xor_forward(x, w_ih, w_hh, b_ih, b_hh, fc_w, fc_b, H)
    y = jax.block_until_ready(y)

    y_ref = lstm_xor_reference(x, w_ih, w_hh, b_ih, b_hh, fc_w, fc_b, H)
    assert y.shape == (B,)
    assert jnp.max(jnp.abs(y - y_ref)) < 1e-5

    print("KERNEL_OK")
</pallas_src>

<mosaic_0001>
module attributes {stable_mosaic.version = 11 : i64} {
  func.func @lstm_xor_kernel(%arg0: i32, %arg1: memref<8x2xf32, #tpu.memory_space<vmem>>, %arg2: memref<1x128xf32, #tpu.memory_space<vmem>>, %arg3: memref<32x128xf32, #tpu.memory_space<vmem>>, %arg4: memref<1x128xf32, #tpu.memory_space<vmem>>, %arg5: memref<2x32xf32, #tpu.memory_space<vmem>>, %arg6: memref<1x1xf32, #tpu.memory_space<smem>>, %arg7: memref<8x1xf32, #tpu.memory_space<vmem>>) attributes {dimension_semantics = [#tpu.dimension_semantics<parallel>], iteration_bounds = array<i64: 1>, scalar_prefetch = 0 : i64, scratch_operands = 0 : i64, tpu.core_type = #tpu.core_type<tc>, window_params = [{transform_indices = @transform_0, window_bounds = array<i64: 8, 2>}, {pipeline_mode = #tpu.pipeline_mode<synchronous>, transform_indices = @transform_1, window_bounds = array<i64: 1, 128>}, {pipeline_mode = #tpu.pipeline_mode<synchronous>, transform_indices = @transform_2, window_bounds = array<i64: 32, 128>}, {pipeline_mode = #tpu.pipeline_mode<synchronous>, transform_indices = @transform_3, window_bounds = array<i64: 1, 128>}, {pipeline_mode = #tpu.pipeline_mode<synchronous>, transform_indices = @transform_4, window_bounds = array<i64: 2, 32>}, {transform_indices = @transform_5, window_bounds = array<i64: 1, 1>}, {transform_indices = @transform_6, window_bounds = array<i64: 8, 1>}]} {
    %c0 = arith.constant 0 : index
    %c0_0 = arith.constant 0 : index
    %0 = vector.load %arg2[%c0, %c0_0] : memref<1x128xf32, #tpu.memory_space<vmem>>, vector<1x128xf32>
    %c0_1 = arith.constant 0 : index
    %c0_2 = arith.constant 0 : index
    %1 = vector.load %arg3[%c0_1, %c0_2] : memref<32x128xf32, #tpu.memory_space<vmem>>, vector<32x128xf32>
    %c0_3 = arith.constant 0 : index
    %c0_4 = arith.constant 0 : index
    %2 = vector.load %arg4[%c0_3, %c0_4] : memref<1x128xf32, #tpu.memory_space<vmem>>, vector<1x128xf32>
    %c0_5 = arith.constant 0 : index
    %c0_6 = arith.constant 0 : index
    %3 = vector.load %arg5[%c0_5, %c0_6] : memref<2x32xf32, #tpu.memory_space<vmem>>, vector<1x32xf32>
    %c1 = arith.constant 1 : index
    %c0_7 = arith.constant 0 : index
    %4 = vector.load %arg5[%c1, %c0_7] : memref<2x32xf32, #tpu.memory_space<vmem>>, vector<1x32xf32>
    %c0_8 = arith.constant 0 : index
    %c0_9 = arith.constant 0 : index
    %5 = memref.load %arg6[%c0_8, %c0_9] : memref<1x1xf32, #tpu.memory_space<smem>>
    %c0_10 = arith.constant 0 : index
    %c0_11 = arith.constant 0 : index
    %6 = vector.load %arg1[%c0_10, %c0_11] : memref<8x2xf32, #tpu.memory_space<vmem>>, vector<8x1xf32>
    %7 = vector.broadcast %6 : vector<8x1xf32> to vector<8x128xf32>
    %8 = vector.broadcast %0 : vector<1x128xf32> to vector<8x128xf32>
    %9 = arith.mulf %7, %8 : vector<8x128xf32>
    %10 = vector.broadcast %2 : vector<1x128xf32> to vector<8x128xf32>
    %11 = arith.addf %9, %10 : vector<8x128xf32>
    %12 = arith.negf %11 : vector<8x128xf32>
    %13 = math.exp %12 : vector<8x128xf32>
    %cst = arith.constant 1.000000e+00 : f32
    %14 = vector.broadcast %cst : f32 to vector<8x128xf32>
    %15 = arith.addf %14, %13 : vector<8x128xf32>
    %16 = arith.divf %14, %15 : vector<8x128xf32>
    %17 = vector.extract_strided_slice %16 {offsets = [0, 0], sizes = [8, 32], strides = [1, 1]} : vector<8x128xf32> to vector<8x32xf32>
    %18 = vector.extract_strided_slice %16 {offsets = [0, 64], sizes = [8, 32], strides = [1, 1]} : vector<8x128xf32> to vector<8x32xf32>
    %19 = vector.extract_strided_slice %16 {offsets = [0, 96], sizes = [8, 32], strides = [1, 1]} : vector<8x128xf32> to vector<8x32xf32>
    %cst_12 = arith.constant 2.000000e+00 : f32
    %20 = vector.broadcast %cst_12 : f32 to vector<8x32xf32>
    %21 = arith.mulf %20, %19 : vector<8x32xf32>
    %cst_13 = arith.constant 1.000000e+00 : f32
    %22 = vector.broadcast %cst_13 : f32 to vector<8x32xf32>
    %23 = arith.subf %21, %22 : vector<8x32xf32>
    %24 = arith.mulf %17, %23 : vector<8x32xf32>
    %25 = math.tanh %24 : vector<8x32xf32>
    %26 = arith.mulf %18, %25 : vector<8x32xf32>
    %27 = vector.broadcast %3 : vector<1x32xf32> to vector<8x32xf32>
    %28 = arith.mulf %26, %27 : vector<8x32xf32>
    %c0_14 = arith.constant 0 : index
    %c1_15 = arith.constant 1 : index
    %29 = vector.load %arg1[%c0_14, %c1_15] : memref<8x2xf32, #tpu.memory_space<vmem>>, vector<8x1xf32>
    %30 = vector.broadcast %29 : vector<8x1xf32> to vector<8x128xf32>
    %31 = vector.broadcast %0 : vector<1x128xf32> to vector<8x128xf32>
    %32 = arith.mulf %30, %31 : vector<8x128xf32>
    %cst_16 = arith.constant dense<0.000000e+00> : vector<8x128xf32>
    %33 = tpu.matmul %26, %1, %cst_16 {dimension_numbers = #tpu.dot_dimension_numbers<[1], [0], [0], [1], [0, 0, 1, 1], [], []>} : vector<8x32xf32>, vector<32x128xf32>, vector<8x128xf32> -> vector<8x128xf32>
    %34 = arith.addf %32, %33 : vector<8x128xf32>
    %35 = vector.broadcast %2 : vector<1x128xf32> to vector<8x128xf32>
    %36 = arith.addf %34, %35 : vector<8x128xf32>
    %37 = arith.negf %36 : vector<8x128xf32>
    %38 = math.exp %37 : vector<8x128xf32>
    %cst_17 = arith.constant 1.000000e+00 : f32
    %39 = vector.broadcast %cst_17 : f32 to vector<8x128xf32>
    %40 = arith.addf %39, %38 : vector<8x128xf32>
    %41 = arith.divf %39, %40 : vector<8x128xf32>
    %42 = vector.extract_strided_slice %41 {offsets = [0, 0], sizes = [8, 32], strides = [1, 1]} : vector<8x128xf32> to vector<8x32xf32>
    %43 = vector.extract_strided_slice %41 {offsets = [0, 32], sizes = [8, 32], strides = [1, 1]} : vector<8x128xf32> to vector<8x32xf32>
    %44 = vector.extract_strided_slice %41 {offsets = [0, 64], sizes = [8, 32], strides = [1, 1]} : vector<8x128xf32> to vector<8x32xf32>
    %45 = vector.extract_strided_slice %41 {offsets = [0, 96], sizes = [8, 32], strides = [1, 1]} : vector<8x128xf32> to vector<8x32xf32>
    %cst_18 = arith.constant 2.000000e+00 : f32
    %46 = vector.broadcast %cst_18 : f32 to vector<8x32xf32>
    %47 = arith.mulf %46, %45 : vector<8x32xf32>
    %cst_19 = arith.constant 1.000000e+00 : f32
    %48 = vector.broadcast %cst_19 : f32 to vector<8x32xf32>
    %49 = arith.subf %47, %48 : vector<8x32xf32>
    %50 = arith.mulf %43, %24 : vector<8x32xf32>
    %51 = arith.mulf %42, %49 : vector<8x32xf32>
    %52 = arith.addf %50, %51 : vector<8x32xf32>
    %53 = math.tanh %52 : vector<8x32xf32>
    %54 = arith.mulf %44, %53 : vector<8x32xf32>
    %55 = vector.broadcast %4 : vector<1x32xf32> to vector<8x32xf32>
    %56 = arith.mulf %54, %55 : vector<8x32xf32>
    %57 = arith.addf %28, %56 : vector<8x32xf32>
    %cst_20 = arith.constant dense<0.000000e+00> : vector<8xf32>
    %58 = vector.multi_reduction <add>, %57, %cst_20 [1] : vector<8x32xf32> to vector<8xf32>
    %59 = vector.shape_cast %58 : vector<8xf32> to vector<8x1xf32>
    %60 = vector.broadcast %5 : f32 to vector<8x1xf32>
    %61 = arith.addf %59, %60 : vector<8x1xf32>
    %c0_21 = arith.constant 0 : index
    %c0_22 = arith.constant 0 : index
    %62 = vector.load %arg7[%c0_21, %c0_22] : memref<8x1xf32, #tpu.memory_space<vmem>>, vector<8x1xf32>
    tpu.vector_store %arg7[%c0_21, %c0_22], %61 {strides = array<i32>} : memref<8x1xf32, #tpu.memory_space<vmem>>, vector<8x1xf32>,
    return
  }
  func.func @transform_0(%arg0: i32) -> (i32, i32) {
    %c0_i32 = arith.constant 0 : i32
    %c0_i32_0 = arith.constant 0 : i32
    return %arg0, %c0_i32 : i32, i32
  }
  func.func @transform_1(%arg0: i32) -> (i32, i32) {
    %c0_i32 = arith.constant 0 : i32
    %c0_i32_0 = arith.constant 0 : i32
    %c0_i32_1 = arith.constant 0 : i32
    return %c0_i32, %c0_i32_0 : i32, i32
  }
  func.func @transform_2(%arg0: i32) -> (i32, i32) {
    %c0_i32 = arith.constant 0 : i32
    %c0_i32_0 = arith.constant 0 : i32
    %c0_i32_1 = arith.constant 0 : i32
    return %c0_i32, %c0_i32_0 : i32, i32
  }
  func.func @transform_3(%arg0: i32) -> (i32, i32) {
    %c0_i32 = arith.constant 0 : i32
    %c0_i32_0 = arith.constant 0 : i32
    %c0_i32_1 = arith.constant 0 : i32
    return %c0_i32, %c0_i32_0 : i32, i32
  }
  func.func @transform_4(%arg0: i32) -> (i32, i32) {
    %c0_i32 = arith.constant 0 : i32
    %c0_i32_0 = arith.constant 0 : i32
    %c0_i32_1 = arith.constant 0 : i32
    return %c0_i32, %c0_i32_0 : i32, i32
  }
  func.func @transform_5(%arg0: i32) -> (i32, i32) {
    %c0_i32 = arith.constant 0 : i32
    %c0_i32_0 = arith.constant 0 : i32
    %c0_i32_1 = arith.constant 0 : i32
    return %c0_i32, %c0_i32_0 : i32, i32
  }
  func.func @transform_6(%arg0: i32) -> (i32, i32) {
    %c0_i32 = arith.constant 0 : i32
    %c0_i32_0 = arith.constant 0 : i32
    return %arg0, %c0_i32 : i32, i32
  }
}

</mosaic_0001>

<bundles_post_ra>
// kernel: tpu_custom_call.1
= control target key start
LH: loop header
LB: loop body
LE: loop exit
PB: predicated region body
PF: predicated region fallthrough
CT: control target
= control target key end

     0   :  { %12 = vsyncpa [#allocation4], 0  ;;  %s312_s21 = smov [#allocation3]   ;;  %s402_s0 = inlined_call_operand.vmem [shape: f32[8,2], index: 0, kind: input, shape index: {}]   ;;  %s403_s1 = inlined_call_operand.vmem [shape: f32[1,128], index: 1, kind: input, shape index: {}]   ;;  %s404_s2 = inlined_call_operand.hbm [shape: f32[32,128], index: 2, kind: input, shape index: {}]   ;;  %s405_s3 = inlined_call_operand.vmem [shape: f32[1,128], index: 3, kind: input, shape index: {}]   ;;  %s406_s4 = inlined_call_operand.vmem [shape: f32[2,32], index: 4, kind: input, shape index: {}]   ;;  %s407_s5 = inlined_call_operand.<no memory space> [shape: f32[1,1], index: 5, kind: input, shape index: {}]   ;;  %s408_s6 = inlined_call_operand.vmem [shape: f32[8,1], index: 6, kind: output, shape index: {}]  }
   0x1   :  { %s22_s22 = sshll.u32 %s312_s21, 4  ;;  %s288_s25 = scalar_lea.hbm %s404_s2, 512  ;;  %s23_s22 = int_to_ptr.vmem [resolvable:$true] %s22_s22 }
   0x2   :  { %p289_p0 = scmp.ne.s32.totalorder %s404_s2, %s288_s25  ;;  %p292_p1 = scmp.lt.u32.totalorder %s288_s25, %s404_s2 }
   0x4   :  { %p294_p2 = pnand %p292_p1, %p289_p0 }
   0x6   :  { %297 = shalt.err (!%p294_p2)
}
   0x7   :  { %s298_s30 = scalar_lea.vmem %s23_s22, 512  ;;  %p303_p4 = scmp.lt.s32.totalorder %s23_s22, %s23_s22 }
   0x8   :  { %p299_p3 = scmp.ne.s32.totalorder %s23_s22, %s298_s30  ;;  %p304_p5 = scmp.lt.s32.totalorder %s298_s30, %s298_s30 }
   0xa   :  { %p305_p6 = por %p304_p5, %p303_p4 }
   0xc   :  { %p306_p7 = pnand %p305_p6, %p299_p3 }
   0xe   :  { %309 = shalt.err (!%p306_p7)
}
   0xf   :  { %s313_s7 = smov 128   ;;  %s314_s8 = smov 8  }
  0x10   :  { %28 = dma.hbm_to_vmem [thread:$0]  %s404_s2, 512, %s23_s22, [#allocation4], %s313_s7, %s313_s7, %s314_s8  }
  0x11   :  { %310 = dma.done.wait [#allocation4], 512  }
  0x12   :  { %311 = vsyncadd [#allocation4], 4294966784  ;;  %v315_v0 = vmov 0   ;;  %v47_v1 = vld [vmem:[%s402_s0] sm:$0xff]  ;;  %s316_s0 = smov 32   ;;  %v40_v16 = vld [vmem:[#allocation3 + $0x8] sm:$0xff]  ;;  %v224_v58 = vstv %s407_s5 }
  0x13   :  { %274 = vset.pattern.permute.xlu0 %v315_v0  ;;  %v233_v2 = vld [vmem:[%s403_s1] ss:$0 sm:$0xff]  ;;  %v41_v17 = vld [vmem:[#allocation3 + $0x10] sm:$0xff]  ;;  %v317_v18 = vmov 0.0|0.0   ;;  %v42_v20 = vld [vmem:[#allocation3 + $0x18] sm:$0xff]  ;;  %vm318_vm0 = vmmov 0  }
  0x14   :  { %50 = vperm.xlu0 %274, %v47_v1   ;;  %v234_v4 = vld [vmem:[%s405_s3] ss:$0 sm:$0xff]  ;;  %258 = vmatprep.subr.bf16.mxu0 %v317_v18  ;;  %v319_v21 = vmov 0.0   ;;  %v262_v22 = vpack.c.bf16 %v42_v20, %v41_v17  ;;  %s320_s1 = smov 64   ;;  %v321_v24 = vmov 1   ;;  %vm103_vm1 = vcmask 261120  }
  0x15   :  { %v39_v15 = vld [vmem:[#allocation3] sm:$0xff]  ;;  %255 = vmatprep.mubr.msk.f32.mxu0 %vm318_vm0, %v319_v21  ;;  %vm226_vm2 = vcmask 7168  }
  0x16   :  { %v259_v19 = vpack.c.bf16 %v40_v16, %v39_v15  ;;  %v237_v42 = vld [vmem:[%s406_s4] ss:$0 sm:$0xff]  ;;  %v241_v48 = vld [vmem:[%s406_s4 + $0x1] ss:$0 sm:$0xff] }
  0x18   :  { %260 = vmatpush3.bf16.msra.mxu0 %v259_v19  ;;  %275 = vset.pattern.permute.xlu0 %v321_v24 }
  0x19   :  { %261 = vmatprep.subr.bf16.mxu0 %v317_v18 }
  0x1c   :  { %263 = vmatpush3.bf16.msra.mxu0 %v262_v22 }
  0x93   :  { %v51_v3 = vpop.permute.xlu0 %50 }
  0x94   :  { %v59_v5 = vmul.f32 %v233_v2, %v51_v3 }
  0x96   :  { %v66_v6 = vadd.f32 %v234_v4, %v59_v5 }
  0x98   :  { %v235_v7 = vmul.f32 -1.442695, %v66_v6 }
  0x9a   :  { %276 = vpow2.f32 %v235_v7 }
  0xa4   :  { %v277_v8 = vpop.eup %276 }
  0xa5   :  { %v70_v9 = vadd.f32 1.0, %v277_v8 }
  0xa7   :  { %278 = vrcp.f32 %v70_v9 }
  0xb1   :  { %v279_v10 = vpop.eup %278 }
  0xb2   :  { %v73_v11 = vmul.f32 2.0, %v279_v10 }
  0xb4   :  { %v236_v12 = vadd.f32 -1.0, %v73_v11 }
  0xb6   :  { %76 = vrot.lane.b32.xlu0 %v236_v12, %s316_s0 }
  0xba   :  { %96 = vperm.xlu0 %275, %v47_v1  }
 0x128   :  { %v77_v13 = vpop.permute.xlu0 %76 }
 0x129   :  { %v79_v14 = vmul.f32 %v279_v10, %v77_v13 }
 0x12b   :  { %280 = vtanh.f32 %v79_v14 }
 0x135   :  { %v281_v23 = vpop.eup %280 }
 0x136   :  { %82 = vrot.lane.b32.xlu1 %v281_v23, %s320_s1 }
 0x139   :  { %v97_v28 = vpop.permute.xlu0 %96 }
 0x13a   :  { %v99_v29 = vmul.f32 %v233_v2, %v97_v28 }
 0x1a8   :  { %v83_v25 = vpop.permute.xlu1 %82 }
 0x1a9   :  { %v85_v26 = vmul.f32 %v279_v10, %v83_v25 }
 0x1ab   :  { %101 = vrot.lane.b32.xlu1 %v85_v26, %s320_s1 }
 0x21d   :  { %v102_v27 = vpop.permute.xlu1 %101 }
 0x21e   :  { %256 = vmatmul.mubr.msk.f32.vlgmr.msra.gmra.mrb[0].mxu0 %vm103_vm1, %v102_v27 }
 0x2f1   :  { %v172_v30 = vpop.f32.mrb[0].mxu0 }
 0x2f2   :  { %v176_v31 = vadd.f32 %v172_v30, %v99_v29  ;;  %v257_v32 = vpop.f32.mrb[1].mxu0 }
 0x2f4   :  { %v177_v33 = vadd.f32 %v234_v4, %v176_v31 }
 0x2f6   :  { %v239_v34 = vmul.f32 -1.442695, %v177_v33 }
 0x2f8   :  { %282 = vpow2.f32 %v239_v34 }
 0x302   :  { %v283_v35 = vpop.eup %282 }
 0x303   :  { %v181_v36 = vadd.f32 1.0, %v283_v35 }
 0x305   :  { %284 = vrcp.f32 %v181_v36 }
 0x30f   :  { %v285_v37 = vpop.eup %284 }
 0x310   :  { %v184_v38 = vmul.f32 2.0, %v285_v37 }
 0x312   :  { %v240_v39 = vadd.f32 -1.0, %v184_v38 }
 0x314   :  { %192 = vrot.lane.b32.xlu1 %v240_v39, %s316_s0 }
 0x318   :  { %187 = vrot.lane.b32.xlu1 %v79_v14, %s316_s0 }
 0x386   :  { %v193_v40 = vpop.permute.xlu1 %192 }
 0x387   :  { %v195_v41 = vmul.f32 %v285_v37, %v193_v40 }
 0x389   :  { %197 = vrot.lane.b32.xlu0 %v195_v41, %s316_s0 }
 0x38a   :  { %v188_v43 = vpop.permute.xlu1 %187 }
 0x38b   :  { %v190_v44 = vmul.f32 %v285_v37, %v188_v43 }
 0x38d   :  { %91 = vrot.lane.b32.xlu0 %v237_v42, %s320_s1 }
 0x3fb   :  { %v198_v45 = vpop.permute.xlu0 %197 }
 0x3fc   :  { %v200_v46 = vadd.f32 %v198_v45, %v190_v44 }
 0x3fe   :  { %286 = vtanh.f32 %v200_v46 }
 0x3ff   :  { %v92_v50 = vpop.permute.xlu0 %91 }
 0x400   :  { %v94_v53 = vmul.f32 %v92_v50, %v85_v26 }
 0x408   :  { %v287_v47 = vpop.eup %286 }
 0x409   :  { %203 = vrot.lane.b32.xlu1 %v287_v47, %s316_s0 }
 0x40d   :  { %212 = vrot.lane.b32.xlu1 %v241_v48, %s320_s1 }
 0x47b   :  { %v204_v49 = vpop.permute.xlu1 %203 }
 0x47c   :  { %v206_v51 = vmul.f32 %v285_v37, %v204_v49 }
 0x47f   :  { %v213_v52 = vpop.permute.xlu1 %212 }
 0x480   :  { %v215_v54 = vmul.f32 %v213_v52, %v206_v51 }
 0x482   :  { %v216_v55 = vadd.f32 %v215_v54, %v94_v53 }
 0x484   :  { %218 = vrot.lane.b32.xlu0 %v216_v55, %s320_s1 }
 0x4f6   :  { %v219_v56 = vpop.permute.xlu0 %218 }
 0x4f7   :  { %v221_v57 = vsel %vm103_vm1, %v219_v56, 0.0 }
 0x4f8   :  { %222 = vadd.xlane.f32.xlu1 %v221_v57 }
 0x585   :  { %v223_v59 = vpop.xlane.xlu1 %222 }
 0x586   :  { %v225_v60 = vadd.f32 %v224_v58, %v223_v59 }
 0x588   :  { %227 = vst.msk [vmem:[%s408_s6] sm:$0xff] %vm226_vm2, %v225_v60 }
 0x589   :  { %232 = vsyncpa [#allocation4], 1 }

</bundles_post_ra>
